<compile_context>
chip_gen: v7x
topology: tpu7x:2x2x1
jax: 0.10.0
libtpu: 0.0.40
codegen_flags: <defaults>
</compile_context>

<pallas_src>
import jax
import jax.numpy as jnp
from jax.experimental import pallas as pl
from jax.experimental.pallas import tpu as pltpu

N = 3                  # number of paths
F_IN = N * 3           # flattened (emission, time, cost) per path
F_OUT = N
LANES = 128            # TPU lane width: lane-dense padded output width


def _round_up(x, m):
    return ((x + m - 1) // m) * m


def _linear_vpu_kernel(x_ref, w_ref, b_ref, o_ref):
    # x_ref: [TB, F_IN]   w_ref: [F_IN, LANES]   b_ref: [8, LANES]
    # o_ref: [TB, LANES]  (lane-dense, padded output; cols >= F_OUT are zero)
    tb, lanes = o_ref.shape
    x = x_ref[...]
    # start from the (sublane-broadcast) bias row
    acc = jnp.broadcast_to(b_ref[0:1, :], (tb, lanes))
    # Unrolled K=9 contraction as VPU FMAs — no MXU for a 9x3 matmul.
    for k in range(F_IN):
        acc = acc + x[:, k:k + 1] * w_ref[k:k + 1, :]
    o_ref[...] = acc.astype(o_ref.dtype)


def ai_forward(x, w, b, *, max_tile=1024):
    """Pallas equivalent of AI.forward: Linear(N*3, N).

    x: [B, F_IN] float32
    w: [F_IN, F_OUT] float32   (transposed vs. PyTorch's [out, in] layout)
    b: [F_OUT] float32
    returns: [B, F_OUT] float32
    """
    B = x.shape[0]

    # Batch tile: multiple of 8 sublanes, up to `max_tile` rows.
    tb = min(max_tile, _round_up(B, 8))
    b_pad_rows = _round_up(B, tb)

    # Pad batch (rows) and make params lane-dense (zero-padded to 128 lanes).
    x_p = jnp.zeros((b_pad_rows, F_IN), jnp.float32).at[:B, :].set(x)
    w_p = jnp.zeros((F_IN, LANES), jnp.float32).at[:, :F_OUT].set(w)
    b_p = jnp.zeros((8, LANES), jnp.float32).at[0, :F_OUT].set(b.reshape(-1))

    y_pad = pl.pallas_call(
        _linear_vpu_kernel,
        out_shape=jax.ShapeDtypeStruct((b_pad_rows, LANES), jnp.float32),
        grid=(b_pad_rows // tb,),
        in_specs=[
            pl.BlockSpec((tb, F_IN), lambda i: (i, 0)),     # batch-tiled input
            pl.BlockSpec((F_IN, LANES), lambda i: (0, 0)),  # resident weight
            pl.BlockSpec((8, LANES), lambda i: (0, 0)),     # resident bias tile
        ],
        out_specs=pl.BlockSpec((tb, LANES), lambda i: (i, 0)),
        compiler_params=pltpu.CompilerParams(
            dimension_semantics=("parallel",),  # shard batch across TCs (v7x)
        ),
    )(x_p, w_p, b_p)

    return y_pad[:B, :F_OUT]


def init_params(key):
    """Deterministic nn.Linear-style init: U(-1/sqrt(fan_in), +1/sqrt(fan_in))."""
    kw, kb = jax.random.split(key)
    bound = 1.0 / jnp.sqrt(jnp.float32(F_IN))
    w = jax.random.uniform(kw, (F_IN, F_OUT), jnp.float32, -bound, bound)
    b = jax.random.uniform(kb, (F_OUT,), jnp.float32, -bound, bound)
    return w, b


if __name__ == "__main__":
    key = jax.random.PRNGKey(0)
    w, b = init_params(key)

    # Input consistent with AI.forward / transform(): each sample is the
    # flattened (emission, time, cost) triples of its N=3 paths -> [B, 9].
    dataset = [
        [(2.5, 3.3, 1.6), (5.6, 4.1, 1.1), (0.5, 0.3, 0.1)],
        [(6.1, 8.5, 10.6), (5.6, 4.1, 0.2), (0.9, 0.1, 0.1)],
        [(4.4, 3.3, 2.2), (8.5, 4.3, 0.0), (0.1, 0.6, 100.0)],
    ]
    x = jnp.array(
        [[v for path in sample for v in path] for sample in dataset],
        dtype=jnp.float32,
    )  # shape [3, 9]

    fwd = jax.jit(ai_forward)
    y = fwd(x, w, b)
    y = jax.block_until_ready(y)

    # Reference check against plain JAX
    y_ref = x @ w + b[None, :]
    assert y.shape == (x.shape[0], F_OUT)
    assert jnp.allclose(y, y_ref, atol=1e-5), "mismatch vs reference"

    print("KERNEL_OK")
</pallas_src>

<mosaic_0001>
module attributes {stable_mosaic.version = 11 : i64} {
  func.func @_linear_vpu_kernel(%arg0: i32, %arg1: memref<8x9xf32, #tpu.memory_space<vmem>>, %arg2: memref<9x128xf32, #tpu.memory_space<vmem>>, %arg3: memref<8x128xf32, #tpu.memory_space<vmem>>, %arg4: memref<8x128xf32, #tpu.memory_space<vmem>>) attributes {dimension_semantics = [#tpu.dimension_semantics<parallel>], iteration_bounds = array<i64: 1>, scalar_prefetch = 0 : i64, scratch_operands = 0 : i64, tpu.core_type = #tpu.core_type<tc>, window_params = [{transform_indices = @transform_0, window_bounds = array<i64: 8, 9>}, {pipeline_mode = #tpu.pipeline_mode<synchronous>, transform_indices = @transform_1, window_bounds = array<i64: 9, 128>}, {pipeline_mode = #tpu.pipeline_mode<synchronous>, transform_indices = @transform_2, window_bounds = array<i64: 8, 128>}, {transform_indices = @transform_3, window_bounds = array<i64: 8, 128>}]} {
    %c0 = arith.constant 0 : index
    %c0_0 = arith.constant 0 : index
    %0 = vector.load %arg1[%c0, %c0_0] : memref<8x9xf32, #tpu.memory_space<vmem>>, vector<8x9xf32>
    %c0_1 = arith.constant 0 : index
    %c0_2 = arith.constant 0 : index
    %1 = vector.load %arg3[%c0_1, %c0_2] : memref<8x128xf32, #tpu.memory_space<vmem>>, vector<1x128xf32>
    %2 = vector.shape_cast %1 : vector<1x128xf32> to vector<1x128xf32>
    %3 = vector.broadcast %2 : vector<1x128xf32> to vector<8x128xf32>
    %4 = vector.extract_strided_slice %0 {offsets = [0, 0], sizes = [8, 1], strides = [1, 1]} : vector<8x9xf32> to vector<8x1xf32>
    %c0_3 = arith.constant 0 : index
    %c0_4 = arith.constant 0 : index
    %5 = vector.load %arg2[%c0_3, %c0_4] : memref<9x128xf32, #tpu.memory_space<vmem>>, vector<1x128xf32>
    %6 = vector.broadcast %4 : vector<8x1xf32> to vector<8x128xf32>
    %7 = vector.broadcast %5 : vector<1x128xf32> to vector<8x128xf32>
    %8 = arith.mulf %6, %7 : vector<8x128xf32>
    %9 = arith.addf %3, %8 : vector<8x128xf32>
    %10 = vector.extract_strided_slice %0 {offsets = [0, 1], sizes = [8, 1], strides = [1, 1]} : vector<8x9xf32> to vector<8x1xf32>
    %c1 = arith.constant 1 : index
    %c0_5 = arith.constant 0 : index
    %11 = vector.load %arg2[%c1, %c0_5] : memref<9x128xf32, #tpu.memory_space<vmem>>, vector<1x128xf32>
    %12 = vector.broadcast %10 : vector<8x1xf32> to vector<8x128xf32>
    %13 = vector.broadcast %11 : vector<1x128xf32> to vector<8x128xf32>
    %14 = arith.mulf %12, %13 : vector<8x128xf32>
    %15 = arith.addf %9, %14 : vector<8x128xf32>
    %16 = vector.extract_strided_slice %0 {offsets = [0, 2], sizes = [8, 1], strides = [1, 1]} : vector<8x9xf32> to vector<8x1xf32>
    %c2 = arith.constant 2 : index
    %c0_6 = arith.constant 0 : index
    %17 = vector.load %arg2[%c2, %c0_6] : memref<9x128xf32, #tpu.memory_space<vmem>>, vector<1x128xf32>
    %18 = vector.broadcast %16 : vector<8x1xf32> to vector<8x128xf32>
    %19 = vector.broadcast %17 : vector<1x128xf32> to vector<8x128xf32>
    %20 = arith.mulf %18, %19 : vector<8x128xf32>
    %21 = arith.addf %15, %20 : vector<8x128xf32>
    %22 = vector.extract_strided_slice %0 {offsets = [0, 3], sizes = [8, 1], strides = [1, 1]} : vector<8x9xf32> to vector<8x1xf32>
    %c3 = arith.constant 3 : index
    %c0_7 = arith.constant 0 : index
    %23 = vector.load %arg2[%c3, %c0_7] : memref<9x128xf32, #tpu.memory_space<vmem>>, vector<1x128xf32>
    %24 = vector.broadcast %22 : vector<8x1xf32> to vector<8x128xf32>
    %25 = vector.broadcast %23 : vector<1x128xf32> to vector<8x128xf32>
    %26 = arith.mulf %24, %25 : vector<8x128xf32>
    %27 = arith.addf %21, %26 : vector<8x128xf32>
    %28 = vector.extract_strided_slice %0 {offsets = [0, 4], sizes = [8, 1], strides = [1, 1]} : vector<8x9xf32> to vector<8x1xf32>
    %c4 = arith.constant 4 : index
    %c0_8 = arith.constant 0 : index
    %29 = vector.load %arg2[%c4, %c0_8] : memref<9x128xf32, #tpu.memory_space<vmem>>, vector<1x128xf32>
    %30 = vector.broadcast %28 : vector<8x1xf32> to vector<8x128xf32>
    %31 = vector.broadcast %29 : vector<1x128xf32> to vector<8x128xf32>
    %32 = arith.mulf %30, %31 : vector<8x128xf32>
    %33 = arith.addf %27, %32 : vector<8x128xf32>
    %34 = vector.extract_strided_slice %0 {offsets = [0, 5], sizes = [8, 1], strides = [1, 1]} : vector<8x9xf32> to vector<8x1xf32>
    %c5 = arith.constant 5 : index
    %c0_9 = arith.constant 0 : index
    %35 = vector.load %arg2[%c5, %c0_9] : memref<9x128xf32, #tpu.memory_space<vmem>>, vector<1x128xf32>
    %36 = vector.broadcast %34 : vector<8x1xf32> to vector<8x128xf32>
    %37 = vector.broadcast %35 : vector<1x128xf32> to vector<8x128xf32>
    %38 = arith.mulf %36, %37 : vector<8x128xf32>
    %39 = arith.addf %33, %38 : vector<8x128xf32>
    %40 = vector.extract_strided_slice %0 {offsets = [0, 6], sizes = [8, 1], strides = [1, 1]} : vector<8x9xf32> to vector<8x1xf32>
    %c6 = arith.constant 6 : index
    %c0_10 = arith.constant 0 : index
    %41 = vector.load %arg2[%c6, %c0_10] : memref<9x128xf32, #tpu.memory_space<vmem>>, vector<1x128xf32>
    %42 = vector.broadcast %40 : vector<8x1xf32> to vector<8x128xf32>
    %43 = vector.broadcast %41 : vector<1x128xf32> to vector<8x128xf32>
    %44 = arith.mulf %42, %43 : vector<8x128xf32>
    %45 = arith.addf %39, %44 : vector<8x128xf32>
    %46 = vector.extract_strided_slice %0 {offsets = [0, 7], sizes = [8, 1], strides = [1, 1]} : vector<8x9xf32> to vector<8x1xf32>
    %c7 = arith.constant 7 : index
    %c0_11 = arith.constant 0 : index
    %47 = vector.load %arg2[%c7, %c0_11] : memref<9x128xf32, #tpu.memory_space<vmem>>, vector<1x128xf32>
    %48 = vector.broadcast %46 : vector<8x1xf32> to vector<8x128xf32>
    %49 = vector.broadcast %47 : vector<1x128xf32> to vector<8x128xf32>
    %50 = arith.mulf %48, %49 : vector<8x128xf32>
    %51 = arith.addf %45, %50 : vector<8x128xf32>
    %52 = vector.extract_strided_slice %0 {offsets = [0, 8], sizes = [8, 1], strides = [1, 1]} : vector<8x9xf32> to vector<8x1xf32>
    %c8 = arith.constant 8 : index
    %c0_12 = arith.constant 0 : index
    %53 = vector.load %arg2[%c8, %c0_12] : memref<9x128xf32, #tpu.memory_space<vmem>>, vector<1x128xf32>
    %54 = vector.broadcast %52 : vector<8x1xf32> to vector<8x128xf32>
    %55 = vector.broadcast %53 : vector<1x128xf32> to vector<8x128xf32>
    %56 = arith.mulf %54, %55 : vector<8x128xf32>
    %57 = arith.addf %51, %56 : vector<8x128xf32>
    %c0_13 = arith.constant 0 : index
    %c0_14 = arith.constant 0 : index
    %58 = vector.load %arg4[%c0_13, %c0_14] : memref<8x128xf32, #tpu.memory_space<vmem>>, vector<8x128xf32>
    tpu.vector_store %arg4[%c0_13, %c0_14], %57 {strides = array<i32>} : memref<8x128xf32, #tpu.memory_space<vmem>>, vector<8x128xf32>,
    return
  }
  func.func @transform_0(%arg0: i32) -> (i32, i32) {
    %c0_i32 = arith.constant 0 : i32
    %c0_i32_0 = arith.constant 0 : i32
    return %arg0, %c0_i32 : i32, i32
  }
  func.func @transform_1(%arg0: i32) -> (i32, i32) {
    %c0_i32 = arith.constant 0 : i32
    %c0_i32_0 = arith.constant 0 : i32
    %c0_i32_1 = arith.constant 0 : i32
    return %c0_i32, %c0_i32_0 : i32, i32
  }
  func.func @transform_2(%arg0: i32) -> (i32, i32) {
    %c0_i32 = arith.constant 0 : i32
    %c0_i32_0 = arith.constant 0 : i32
    %c0_i32_1 = arith.constant 0 : i32
    return %c0_i32, %c0_i32_0 : i32, i32
  }
  func.func @transform_3(%arg0: i32) -> (i32, i32) {
    %c0_i32 = arith.constant 0 : i32
    %c0_i32_0 = arith.constant 0 : i32
    return %arg0, %c0_i32 : i32, i32
  }
}

</mosaic_0001>

<bundles_post_ra>
// kernel: ai_forward.1
= control target key start
LH: loop header
LB: loop body
LE: loop exit
PB: predicated region body
PF: predicated region fallthrough
CT: control target
= control target key end

     0   :  { %v153_v0 = vmov 2   ;;  %v154_v1 = vmov 0   ;;  %v155_v3 = vmov 3   ;;  %v156_v4 = vmov 1   ;;  %s218_s0 = inlined_call_operand.vmem [shape: f32[8,9], index: 0, kind: input, shape index: {}]   ;;  %s219_s1 = inlined_call_operand.vmem [shape: f32[9,128], index: 1, kind: input, shape index: {}]   ;;  %s220_s2 = inlined_call_operand.vmem [shape: f32[8,128], index: 2, kind: input, shape index: {}]   ;;  %s221_s3 = inlined_call_operand.vmem [shape: f32[8,128], index: 3, kind: output, shape index: {}]  }
   0x1   :  { %146 = vset.pattern.permute.xlu1 %v153_v0  ;;  %144 = vset.pattern.permute.xlu0 %v154_v1  ;;  %v14_v2 = vld [vmem:[%s218_s0] sm:$0xff]  ;;  %v157_v5 = vmov 4   ;;  %v158_v6 = vmov 5   ;;  %v159_v7 = vmov 6   ;;  %v160_v8 = vmov 8  }
   0x2   :  { %45 = vperm.xlu1 %146, %v14_v2   ;;  %23 = vperm.xlu0 %144, %v14_v2   ;;  %v161_v9 = vmov 7   ;;  %v126_v10 = vld [vmem:[%s219_s1] ss:$0 sm:$0xff]  ;;  %v127_v15 = vld [vmem:[%s219_s1 + $0x1] ss:$0 sm:$0xff] }
   0x3   :  { %v125_v13 = vld [vmem:[%s220_s2] ss:$0 sm:$0xff]  ;;  %v128_v17 = vld [vmem:[%s219_s1 + $0x2] ss:$0 sm:$0xff]  ;;  %v129_v21 = vld [vmem:[%s219_s1 + $0x3] ss:$0 sm:$0xff] }
   0x4   :  { %v130_v24 = vld [vmem:[%s219_s1 + $0x4] ss:$0 sm:$0xff]  ;;  %v131_v28 = vld [vmem:[%s219_s1 + $0x5] ss:$0 sm:$0xff]  ;;  %v132_v34 = vld [vmem:[%s219_s1 + $0x6] ss:$0 sm:$0xff] }
   0x5   :  { %v133_v38 = vld [vmem:[%s219_s1 + $0x7] ss:$0 sm:$0xff]  ;;  %v134_v39 = vld [vmem:[%s219_s1 + $0x8] ss:$0 sm:$0xff] }
   0x6   :  { %147 = vset.pattern.permute.xlu1 %v155_v3  ;;  %145 = vset.pattern.permute.xlu0 %v156_v4 }
   0x7   :  { %56 = vperm.xlu1 %147, %v14_v2   ;;  %34 = vperm.xlu0 %145, %v14_v2  }
   0xb   :  { %148 = vset.pattern.permute.xlu1 %v157_v5  ;;  %149 = vset.pattern.permute.xlu0 %v158_v6 }
   0xc   :  { %67 = vperm.xlu1 %148, %v14_v2   ;;  %78 = vperm.xlu0 %149, %v14_v2  }
  0x10   :  { %150 = vset.pattern.permute.xlu1 %v159_v7  ;;  %152 = vset.pattern.permute.xlu0 %v160_v8 }
  0x11   :  { %89 = vperm.xlu1 %150, %v14_v2   ;;  %111 = vperm.xlu0 %152, %v14_v2  }
  0x15   :  { %151 = vset.pattern.permute.xlu1 %v161_v9 }
  0x16   :  { %100 = vperm.xlu1 %151, %v14_v2  }
  0x81   :  { %v46_v11 = vpop.permute.xlu1 %45  ;;  %v24_v12 = vpop.permute.xlu0 %23 }
  0x82   :  { %v30_v14 = vmul.f32 %v126_v10, %v24_v12  ;;  %v52_v22 = vmul.f32 %v128_v17, %v46_v11 }
  0x84   :  { %v31_v16 = vadd.f32 %v125_v13, %v30_v14 }
  0x86   :  { %v57_v18 = vpop.permute.xlu1 %56  ;;  %v35_v19 = vpop.permute.xlu0 %34 }
  0x87   :  { %v41_v20 = vmul.f32 %v127_v15, %v35_v19  ;;  %v63_v25 = vmul.f32 %v129_v21, %v57_v18 }
  0x89   :  { %v42_v23 = vadd.f32 %v41_v20, %v31_v16 }
  0x8b   :  { %v53_v26 = vadd.f32 %v52_v22, %v42_v23  ;;  %v68_v27 = vpop.permute.xlu1 %67  ;;  %v79_v29 = vpop.permute.xlu0 %78 }
  0x8c   :  { %v74_v30 = vmul.f32 %v130_v24, %v68_v27  ;;  %v85_v32 = vmul.f32 %v131_v28, %v79_v29 }
  0x8d   :  { %v64_v31 = vadd.f32 %v63_v25, %v53_v26 }
  0x8f   :  { %v75_v33 = vadd.f32 %v74_v30, %v64_v31 }
  0x90   :  { %v90_v35 = vpop.permute.xlu1 %89  ;;  %v112_v40 = vpop.permute.xlu0 %111 }
  0x91   :  { %v86_v36 = vadd.f32 %v85_v32, %v75_v33  ;;  %v96_v37 = vmul.f32 %v132_v34, %v90_v35  ;;  %v118_v44 = vmul.f32 %v134_v39, %v112_v40 }
  0x93   :  { %v97_v42 = vadd.f32 %v96_v37, %v86_v36 }
  0x95   :  { %v101_v41 = vpop.permute.xlu1 %100 }
  0x96   :  { %v107_v43 = vmul.f32 %v133_v38, %v101_v41 }
  0x98   :  { %v108_v45 = vadd.f32 %v107_v43, %v97_v42 }
  0x9a   :  { %v119_v46 = vadd.f32 %v118_v44, %v108_v45 }
  0x9c   :  { %120 = vst [vmem:[%s221_s3] sm:$0xff] %v119_v46 }

</bundles_post_ra>
